<compile_context>
chip_gen: v7x
topology: tpu7x:2x2x1
jax: 0.10.0
libtpu: 0.0.40
codegen_flags: <defaults>
</compile_context>

<pallas_src>
import functools

import jax
import jax.numpy as jnp
from jax.experimental import pallas as pl
from jax.experimental.pallas import tpu as pltpu

DROP_P = 0.7
LATENT = 100
HIDDEN = 256
OUT = 784
K_PAD = 128     # latent padded to lane width
OUT_PAD = 896   # 7 * 128, lane-dense output


def _round_up(n, m):
    return ((n + m - 1) // m) * m


def _generator_kernel(x_ref, w1_ref, b1_ref, w2_ref, b2_ref, w3_ref, b3_ref,
                      *rest, training: bool):
    if training:
        mask_ref, o_ref = rest
    else:
        (o_ref,) = rest

    # Linear(128->256) + ReLU. bf16 operands, f32 accumulation on the MXU.
    h1 = jnp.dot(x_ref[...], w1_ref[...],
                 preferred_element_type=jnp.float32) + b1_ref[...]
    h1 = jnp.maximum(h1, 0.0)

    # Linear(256->256)
    h2 = jnp.dot(h1.astype(jnp.bfloat16), w2_ref[...],
                 preferred_element_type=jnp.float32) + b2_ref[...]

    # Dropout(p=0.7): mask holds {0, 1/(1-p)} -> a single VPU multiply.
    if training:
        h2 = h2 * mask_ref[...]

    # ReLU
    h2 = jnp.maximum(h2, 0.0)

    # Linear(256->896 padded) + Tanh, lane-dense store.
    h3 = jnp.dot(h2.astype(jnp.bfloat16), w3_ref[...],
                 preferred_element_type=jnp.float32) + b3_ref[...]
    o_ref[...] = jnp.tanh(h3)


def generator_forward(x, params, *, seed=0, training=True):
    """Pallas implementation of generator.forward.

    x: (B, 100) float32
    params: dict with w1(100,256) b1(256,) w2(256,256) b2(256,) w3(256,784) b3(784,)
    """
    B = x.shape[0]

    # Batch tile: fill MXU rows for large batches, one small tile otherwise.
    b8 = _round_up(max(B, 8), 8)
    tm = b8 if b8 <= 256 else 256
    bp = _round_up(b8, tm)
    grid = (bp // tm,)

    # Pad latent K=100 -> 128 and batch B -> bp; bf16 matmul operands.
    x_p = jnp.zeros((bp, K_PAD), jnp.float32).at[:B, :LATENT].set(x)
    x_p = x_p.astype(jnp.bfloat16)

    w1 = jnp.zeros((K_PAD, HIDDEN), jnp.float32).at[:LATENT, :].set(params["w1"])
    w1 = w1.astype(jnp.bfloat16)
    b1 = params["b1"].reshape(1, HIDDEN).astype(jnp.float32)

    w2 = params["w2"].astype(jnp.bfloat16)
    b2 = params["b2"].reshape(1, HIDDEN).astype(jnp.float32)

    # Pad output 784 -> 896 (7*128) for dense vector stores.
    w3 = jnp.zeros((HIDDEN, OUT_PAD), jnp.float32).at[:, :OUT].set(params["w3"])
    w3 = w3.astype(jnp.bfloat16)
    b3 = jnp.zeros((1, OUT_PAD), jnp.float32).at[:, :OUT].set(
        params["b3"].reshape(1, OUT))

    const = lambda i: (0, 0)
    in_specs = [
        pl.BlockSpec((tm, K_PAD), lambda i: (i, 0)),        # x tile
        pl.BlockSpec((K_PAD, HIDDEN), const),               # w1 (resident)
        pl.BlockSpec((1, HIDDEN), const),                   # b1
        pl.BlockSpec((HIDDEN, HIDDEN), const),              # w2
        pl.BlockSpec((1, HIDDEN), const),                   # b2
        pl.BlockSpec((HIDDEN, OUT_PAD), const),             # w3
        pl.BlockSpec((1, OUT_PAD), const),                  # b3
    ]
    args = [x_p, w1, b1, w2, b2, w3, b3]

    if training:
        keep = jax.random.bernoulli(jax.random.PRNGKey(seed), 1.0 - DROP_P,
                                    (bp, HIDDEN))
        mask = keep.astype(jnp.float32) * (1.0 / (1.0 - DROP_P))
        in_specs.append(pl.BlockSpec((tm, HIDDEN), lambda i: (i, 0)))
        args.append(mask)

    kernel = functools.partial(_generator_kernel, training=training)

    out = pl.pallas_call(
        kernel,
        out_shape=jax.ShapeDtypeStruct((bp, OUT_PAD), jnp.float32),
        grid=grid,
        in_specs=in_specs,
        out_specs=pl.BlockSpec((tm, OUT_PAD), lambda i: (i, 0)),
        compiler_params=pltpu.CompilerParams(
            dimension_semantics=("parallel",)),
    )(*args)

    return out[:B, :OUT]


def init_params(key):
    """Deterministic init with shapes matching the PyTorch module."""
    ks = jax.random.split(key, 6)

    def lin(kw, kb, fan_in, fan_out):
        bound = 1.0 / jnp.sqrt(fan_in)
        w = jax.random.uniform(kw, (fan_in, fan_out), jnp.float32, -bound, bound)
        b = jax.random.uniform(kb, (fan_out,), jnp.float32, -bound, bound)
        return w, b

    w1, b1 = lin(ks[0], ks[1], LATENT, HIDDEN)
    w2, b2 = lin(ks[2], ks[3], HIDDEN, HIDDEN)
    w3, b3 = lin(ks[4], ks[5], HIDDEN, OUT)
    return {"w1": w1, "b1": b1, "w2": w2, "b2": b2, "w3": w3, "b3": b3}


if __name__ == "__main__":
    key = jax.random.PRNGKey(0)
    k_param, k_x = jax.random.split(key)

    params = init_params(k_param)
    x = jax.random.normal(k_x, (8, LATENT), dtype=jnp.float32)  # batch=8, latent=100

    # Training-mode forward (dropout active, matching nn.Module's default mode).
    out = jax.block_until_ready(generator_forward(x, params, seed=0, training=True))
    assert out.shape == (8, OUT) and out.dtype == jnp.float32
    assert bool(jnp.all(jnp.isfinite(out)))

    # Eval-mode forward (dropout = identity) vs a plain-JAX reference that uses
    # the same bf16-operand / f32-accumulate matmul recipe.
    out_eval = jax.block_until_ready(generator_forward(x, params, training=False))

    def bf16_dot(a, w):
        return jnp.dot(a.astype(jnp.bfloat16), w.astype(jnp.bfloat16),
                       preferred_element_type=jnp.float32)

    h = jnp.maximum(bf16_dot(x, params["w1"]) + params["b1"], 0.0)
    h = jnp.maximum(bf16_dot(h, params["w2"]) + params["b2"], 0.0)
    ref = jnp.tanh(bf16_dot(h, params["w3"]) + params["b3"])
    assert jnp.allclose(out_eval, ref, atol=1e-2), "eval-mode mismatch vs JAX reference"

    print("KERNEL_OK")
</pallas_src>

<mosaic_0001>
module attributes {stable_mosaic.version = 11 : i64} {
  func.func @_generator_kernel(%arg0: i32, %arg1: memref<8x128xbf16, #tpu.memory_space<vmem>>, %arg2: memref<128x256xbf16, #tpu.memory_space<vmem>>, %arg3: memref<1x256xf32, #tpu.memory_space<vmem>>, %arg4: memref<256x256xbf16, #tpu.memory_space<vmem>>, %arg5: memref<1x256xf32, #tpu.memory_space<vmem>>, %arg6: memref<256x896xbf16, #tpu.memory_space<vmem>>, %arg7: memref<1x896xf32, #tpu.memory_space<vmem>>, %arg8: memref<8x256xf32, #tpu.memory_space<vmem>>, %arg9: memref<8x896xf32, #tpu.memory_space<vmem>>) attributes {dimension_semantics = [#tpu.dimension_semantics<parallel>], iteration_bounds = array<i64: 1>, scalar_prefetch = 0 : i64, scratch_operands = 0 : i64, tpu.core_type = #tpu.core_type<tc>, window_params = [{transform_indices = @transform_0, window_bounds = array<i64: 8, 128>}, {pipeline_mode = #tpu.pipeline_mode<synchronous>, transform_indices = @transform_1, window_bounds = array<i64: 128, 256>}, {pipeline_mode = #tpu.pipeline_mode<synchronous>, transform_indices = @transform_2, window_bounds = array<i64: 1, 256>}, {pipeline_mode = #tpu.pipeline_mode<synchronous>, transform_indices = @transform_3, window_bounds = array<i64: 256, 256>}, {pipeline_mode = #tpu.pipeline_mode<synchronous>, transform_indices = @transform_4, window_bounds = array<i64: 1, 256>}, {pipeline_mode = #tpu.pipeline_mode<synchronous>, transform_indices = @transform_5, window_bounds = array<i64: 256, 896>}, {pipeline_mode = #tpu.pipeline_mode<synchronous>, transform_indices = @transform_6, window_bounds = array<i64: 1, 896>}, {transform_indices = @transform_7, window_bounds = array<i64: 8, 256>}, {transform_indices = @transform_8, window_bounds = array<i64: 8, 896>}]} {
    %c0 = arith.constant 0 : index
    %c0_0 = arith.constant 0 : index
    %0 = vector.load %arg1[%c0, %c0_0] : memref<8x128xbf16, #tpu.memory_space<vmem>>, vector<8x128xbf16>
    %c0_1 = arith.constant 0 : index
    %c0_2 = arith.constant 0 : index
    %1 = vector.load %arg2[%c0_1, %c0_2] : memref<128x256xbf16, #tpu.memory_space<vmem>>, vector<128x256xbf16>
    %cst = arith.constant dense<0.000000e+00> : vector<8x256xf32>
    %2 = tpu.matmul %0, %1, %cst {dimension_numbers = #tpu.dot_dimension_numbers<[1], [0], [0], [1], [0, 0, 1, 1], [], []>} : vector<8x128xbf16>, vector<128x256xbf16>, vector<8x256xf32> -> vector<8x256xf32>
    %c0_3 = arith.constant 0 : index
    %c0_4 = arith.constant 0 : index
    %3 = vector.load %arg3[%c0_3, %c0_4] : memref<1x256xf32, #tpu.memory_space<vmem>>, vector<1x256xf32>
    %4 = vector.broadcast %3 : vector<1x256xf32> to vector<8x256xf32>
    %5 = arith.addf %2, %4 : vector<8x256xf32>
    %cst_5 = arith.constant 0.000000e+00 : f32
    %6 = vector.broadcast %cst_5 : f32 to vector<8x256xf32>
    %7 = arith.maximumf %5, %6 : vector<8x256xf32>
    %8 = arith.truncf %7 : vector<8x256xf32> to vector<8x256xbf16>
    %c0_6 = arith.constant 0 : index
    %c0_7 = arith.constant 0 : index
    %9 = vector.load %arg4[%c0_6, %c0_7] : memref<256x256xbf16, #tpu.memory_space<vmem>>, vector<256x256xbf16>
    %cst_8 = arith.constant dense<0.000000e+00> : vector<8x256xf32>
    %10 = tpu.matmul %8, %9, %cst_8 {dimension_numbers = #tpu.dot_dimension_numbers<[1], [0], [0], [1], [0, 0, 1, 1], [], []>} : vector<8x256xbf16>, vector<256x256xbf16>, vector<8x256xf32> -> vector<8x256xf32>
    %c0_9 = arith.constant 0 : index
    %c0_10 = arith.constant 0 : index
    %11 = vector.load %arg5[%c0_9, %c0_10] : memref<1x256xf32, #tpu.memory_space<vmem>>, vector<1x256xf32>
    %12 = vector.broadcast %11 : vector<1x256xf32> to vector<8x256xf32>
    %13 = arith.addf %10, %12 : vector<8x256xf32>
    %c0_11 = arith.constant 0 : index
    %c0_12 = arith.constant 0 : index
    %14 = vector.load %arg8[%c0_11, %c0_12] : memref<8x256xf32, #tpu.memory_space<vmem>>, vector<8x256xf32>
    %15 = arith.mulf %13, %14 : vector<8x256xf32>
    %cst_13 = arith.constant 0.000000e+00 : f32
    %16 = vector.broadcast %cst_13 : f32 to vector<8x256xf32>
    %17 = arith.maximumf %15, %16 : vector<8x256xf32>
    %18 = arith.truncf %17 : vector<8x256xf32> to vector<8x256xbf16>
    %c0_14 = arith.constant 0 : index
    %c0_15 = arith.constant 0 : index
    %19 = vector.load %arg6[%c0_14, %c0_15] : memref<256x896xbf16, #tpu.memory_space<vmem>>, vector<256x896xbf16>
    %cst_16 = arith.constant dense<0.000000e+00> : vector<8x896xf32>
    %20 = tpu.matmul %18, %19, %cst_16 {dimension_numbers = #tpu.dot_dimension_numbers<[1], [0], [0], [1], [0, 0, 1, 1], [], []>} : vector<8x256xbf16>, vector<256x896xbf16>, vector<8x896xf32> -> vector<8x896xf32>
    %c0_17 = arith.constant 0 : index
    %c0_18 = arith.constant 0 : index
    %21 = vector.load %arg7[%c0_17, %c0_18] : memref<1x896xf32, #tpu.memory_space<vmem>>, vector<1x896xf32>
    %22 = vector.broadcast %21 : vector<1x896xf32> to vector<8x896xf32>
    %23 = arith.addf %20, %22 : vector<8x896xf32>
    %24 = math.tanh %23 : vector<8x896xf32>
    %c0_19 = arith.constant 0 : index
    %c0_20 = arith.constant 0 : index
    %25 = vector.load %arg9[%c0_19, %c0_20] : memref<8x896xf32, #tpu.memory_space<vmem>>, vector<8x896xf32>
    tpu.vector_store %arg9[%c0_19, %c0_20], %24 {strides = array<i32>} : memref<8x896xf32, #tpu.memory_space<vmem>>, vector<8x896xf32>,
    return
  }
  func.func @transform_0(%arg0: i32) -> (i32, i32) {
    %c0_i32 = arith.constant 0 : i32
    %c0_i32_0 = arith.constant 0 : i32
    return %arg0, %c0_i32 : i32, i32
  }
  func.func @transform_1(%arg0: i32) -> (i32, i32) {
    %c0_i32 = arith.constant 0 : i32
    %c0_i32_0 = arith.constant 0 : i32
    %c0_i32_1 = arith.constant 0 : i32
    return %c0_i32, %c0_i32_0 : i32, i32
  }
  func.func @transform_2(%arg0: i32) -> (i32, i32) {
    %c0_i32 = arith.constant 0 : i32
    %c0_i32_0 = arith.constant 0 : i32
    %c0_i32_1 = arith.constant 0 : i32
    return %c0_i32, %c0_i32_0 : i32, i32
  }
  func.func @transform_3(%arg0: i32) -> (i32, i32) {
    %c0_i32 = arith.constant 0 : i32
    %c0_i32_0 = arith.constant 0 : i32
    %c0_i32_1 = arith.constant 0 : i32
    return %c0_i32, %c0_i32_0 : i32, i32
  }
  func.func @transform_4(%arg0: i32) -> (i32, i32) {
    %c0_i32 = arith.constant 0 : i32
    %c0_i32_0 = arith.constant 0 : i32
    %c0_i32_1 = arith.constant 0 : i32
    return %c0_i32, %c0_i32_0 : i32, i32
  }
  func.func @transform_5(%arg0: i32) -> (i32, i32) {
    %c0_i32 = arith.constant 0 : i32
    %c0_i32_0 = arith.constant 0 : i32
    %c0_i32_1 = arith.constant 0 : i32
    return %c0_i32, %c0_i32_0 : i32, i32
  }
  func.func @transform_6(%arg0: i32) -> (i32, i32) {
    %c0_i32 = arith.constant 0 : i32
    %c0_i32_0 = arith.constant 0 : i32
    %c0_i32_1 = arith.constant 0 : i32
    return %c0_i32, %c0_i32_0 : i32, i32
  }
  func.func @transform_7(%arg0: i32) -> (i32, i32) {
    %c0_i32 = arith.constant 0 : i32
    %c0_i32_0 = arith.constant 0 : i32
    return %arg0, %c0_i32 : i32, i32
  }
  func.func @transform_8(%arg0: i32) -> (i32, i32) {
    %c0_i32 = arith.constant 0 : i32
    %c0_i32_0 = arith.constant 0 : i32
    return %arg0, %c0_i32 : i32, i32
  }
}

</mosaic_0001>

<bundles_post_ra>
// kernel: tpu_custom_call.1
= control target key start
LH: loop header
LB: loop body
LE: loop exit
PB: predicated region body
PF: predicated region fallthrough
CT: control target
= control target key end

     0   :  { %13 = vsyncpa [#allocation3], 0  ;;  %s2187_s0 = inlined_call_operand.hbm [shape: bf16[8,128], index: 0, kind: input, shape index: {}]   ;;  %s2188_s1 = inlined_call_operand.hbm [shape: bf16[128,256], index: 1, kind: input, shape index: {}]   ;;  %s2189_s2 = inlined_call_operand.vmem [shape: f32[1,256], index: 2, kind: input, shape index: {}]   ;;  %s2190_s3 = inlined_call_operand.hbm [shape: bf16[256,256], index: 3, kind: input, shape index: {}]   ;;  %s2191_s4 = inlined_call_operand.hbm [shape: f32[1,256], index: 4, kind: input, shape index: {}]   ;;  %s2192_s5 = inlined_call_operand.hbm [shape: bf16[256,896], index: 5, kind: input, shape index: {}]   ;;  %s2193_s6 = inlined_call_operand.vmem [shape: f32[1,896], index: 6, kind: input, shape index: {}]   ;;  %s2194_s7 = inlined_call_operand.vmem [shape: f32[8,256], index: 7, kind: input, shape index: {}]   ;;  %s2195_s8 = inlined_call_operand.hbm [shape: f32[8,896], index: 8, kind: output, shape index: {}]  }
   0x1   :  { %14 = vsyncpa [#allocation6], 0 }
   0x2   :  { %15 = vsyncpa [#allocation9], 0 }
   0x3   :  { %16 = vsyncpa [#allocation4], 0  ;;  %s2016_s27 = smov [#allocation5]   ;;  %s1876_s9 = scalar_lea.hbm %s2188_s1, 2048 }
   0x4   :  { %s32_s28 = sshll.u32 %s2016_s27, 4  ;;  %p1877_p0 = scmp.ne.s32.totalorder %s2188_s1, %s1876_s9  ;;  %s33_s28 = int_to_ptr.vmem [resolvable:$true] %s32_s28 }
   0x5   :  { %p1880_p1 = scmp.lt.u32.totalorder %s1876_s9, %s2188_s1 }
   0x7   :  { %p1882_p2 = pnand %p1880_p1, %p1877_p0 }
   0x9   :  { %1885 = shalt.err (!%p1882_p2)
}
   0xa   :  { %s1886_s14 = scalar_lea.vmem %s33_s28, 2048  ;;  %p1891_p4 = scmp.lt.s32.totalorder %s33_s28, %s33_s28 }
   0xb   :  { %p1887_p3 = scmp.ne.s32.totalorder %s33_s28, %s1886_s14  ;;  %p1892_p5 = scmp.lt.s32.totalorder %s1886_s14, %s1886_s14 }
   0xd   :  { %p1893_p6 = por %p1892_p5, %p1891_p4 }
   0xf   :  { %p1894_p7 = pnand %p1893_p6, %p1887_p3 }
  0x11   :  { %1897 = shalt.err (!%p1894_p7)
}
  0x12   :  { %s2017_s15 = smov 128   ;;  %s2018_s16 = smov 8  }
  0x13   :  { %38 = dma.hbm_to_vmem [thread:$0]  %s2188_s1, 2048, %s33_s28, [#allocation6], %s2017_s15, %s2017_s15, %s2018_s16  }
  0x14   :  { %s2019_s19 = smov [#allocation8]   ;;  %s2020_s21 = smov [#allocation2]  }
  0x15   :  { %s59_s20 = sshll.u32 %s2019_s19, 4  ;;  %s23_s22 = sshll.u32 %s2020_s21, 4  ;;  %s60_s20 = int_to_ptr.vmem [resolvable:$true] %s59_s20  ;;  %s24_s22 = int_to_ptr.vmem [resolvable:$true] %s23_s22 }
  0x16   :  { %s1898_s25 = scalar_lea.hbm %s2191_s4, 32 }
  0x17   :  { %p1899_p8 = scmp.ne.s32.totalorder %s2191_s4, %s1898_s25  ;;  %p1902_p9 = scmp.lt.u32.totalorder %s1898_s25, %s2191_s4 }
  0x19   :  { %p1904_p10 = pnand %p1902_p9, %p1899_p8 }
  0x1b   :  { %1907 = shalt.err (!%p1904_p10)
}
  0x1c   :  { %s1908_s1 = scalar_lea.vmem %s60_s20, 32  ;;  %p1913_p12 = scmp.lt.s32.totalorder %s60_s20, %s60_s20 }
  0x1d   :  { %p1909_p11 = scmp.ne.s32.totalorder %s60_s20, %s1908_s1  ;;  %p1914_p13 = scmp.lt.s32.totalorder %s1908_s1, %s1908_s1 }
  0x1f   :  { %p1915_p0 = por %p1914_p13, %p1913_p12 }
  0x21   :  { %p1916_p1 = pnand %p1915_p0, %p1909_p11 }
  0x23   :  { %1919 = shalt.err (!%p1916_p1)
}
  0x24   :  { %62 = dma.hbm_to_vmem [thread:$0]  %s2191_s4, 32, %s60_s20, [#allocation9]  }
  0x25   :  { %s1920_s12 = scalar_lea.hbm %s2187_s0, 64 }
  0x26   :  { %p1921_p2 = scmp.ne.s32.totalorder %s2187_s0, %s1920_s12  ;;  %p1924_p3 = scmp.lt.u32.totalorder %s1920_s12, %s2187_s0 }
  0x28   :  { %p1926_p4 = pnand %p1924_p3, %p1921_p2 }
  0x2a   :  { %1929 = shalt.err (!%p1926_p4)
}
  0x2b   :  { %s1930_s19 = scalar_lea.vmem %s24_s22, 64  ;;  %p1935_p6 = scmp.lt.s32.totalorder %s24_s22, %s24_s22 }
  0x2c   :  { %p1931_p5 = scmp.ne.s32.totalorder %s24_s22, %s1930_s19  ;;  %p1936_p7 = scmp.lt.s32.totalorder %s1930_s19, %s1930_s19 }
  0x2e   :  { %p1937_p8 = por %p1936_p7, %p1935_p6 }
  0x30   :  { %p1938_p9 = pnand %p1937_p8, %p1931_p5 }
  0x32   :  { %1941 = shalt.err (!%p1938_p9)
}
  0x33   :  { %26 = dma.hbm_to_vmem [thread:$0]  %s2187_s0, 64, %s24_s22, [#allocation3]  }
  0x34   :  { %s2021_s21 = smov [#allocation7]   ;;  %s2022_s24 = smov [#allocation10]  }
  0x35   :  { %s46_s23 = sshll.u32 %s2021_s21, 4  ;;  %s68_s25 = sshll.u32 %s2022_s24, 4  ;;  %s47_s23 = int_to_ptr.vmem [resolvable:$true] %s46_s23  ;;  %s69_s25 = int_to_ptr.vmem [resolvable:$true] %s68_s25 }
  0x36   :  { %s1942_s29 = scalar_lea.hbm %s2190_s3, 4096 }
  0x37   :  { %p1943_p10 = scmp.ne.s32.totalorder %s2190_s3, %s1942_s29  ;;  %p1946_p11 = scmp.lt.u32.totalorder %s1942_s29, %s2190_s3 }
  0x39   :  { %p1948_p12 = pnand %p1946_p11, %p1943_p10 }
  0x3b   :  { %1951 = shalt.err (!%p1948_p12)
}
  0x3c   :  { %s1952_s0 = scalar_lea.vmem %s47_s23, 4096  ;;  %p1957_p0 = scmp.lt.s32.totalorder %s47_s23, %s47_s23 }
  0x3d   :  { %p1953_p13 = scmp.ne.s32.totalorder %s47_s23, %s1952_s0  ;;  %p1958_p1 = scmp.lt.s32.totalorder %s1952_s0, %s1952_s0 }
  0x3f   :  { %p1959_p2 = por %p1958_p1, %p1957_p0 }
  0x41   :  { %p1960_p3 = pnand %p1959_p2, %p1953_p13 }
  0x43   :  { %1963 = shalt.err (!%p1960_p3)
}
  0x44   :  { %52 = dma.hbm_to_vmem [thread:$0]  %s2190_s3, 4096, %s47_s23, [#allocation6], %s2017_s15, %s2017_s15, %s2018_s16  }
  0x45   :  { %s1964_s13 = scalar_lea.hbm %s2192_s5, 14336 }
  0x46   :  { %p1965_p4 = scmp.ne.s32.totalorder %s2192_s5, %s1964_s13  ;;  %p1968_p5 = scmp.lt.u32.totalorder %s1964_s13, %s2192_s5 }
  0x48   :  { %p1970_p6 = pnand %p1968_p5, %p1965_p4 }
  0x4a   :  { %1973 = shalt.err (!%p1970_p6)
}
  0x4b   :  { %s1974_s4 = scalar_lea.vmem %s69_s25, 14336  ;;  %p1979_p8 = scmp.lt.s32.totalorder %s69_s25, %s69_s25 }
  0x4c   :  { %p1975_p7 = scmp.ne.s32.totalorder %s69_s25, %s1974_s4  ;;  %p1980_p9 = scmp.lt.s32.totalorder %s1974_s4, %s1974_s4 }
  0x4e   :  { %p1981_p10 = por %p1980_p9, %p1979_p8 }
  0x50   :  { %p1982_p11 = pnand %p1981_p10, %p1975_p7 }
  0x52   :  { %1985 = shalt.err (!%p1982_p11)
}
  0x53   :  { %s2023_s3 = smov 448   ;;  %s2024_s15 = smov 28  }
  0x54   :  { %74 = dma.hbm_to_vmem [thread:$0]  %s2192_s5, 14336, %s69_s25, [#allocation9], %s2023_s3, %s2023_s3, %s2024_s15  }
  0x55   :  { %2008 = dma.done.wait [#allocation3], 64  }
  0x56   :  { %2009 = vsyncadd [#allocation3], 4294967232 }
  0x57   :  { %2010 = dma.done.wait [#allocation6], 6144  }
  0x58   :  { %2011 = vsyncadd [#allocation6], 4294961152 }
  0x59   :  { %2012 = dma.done.wait [#allocation9], 14368  }
  0x5a   :  { %2013 = vsyncadd [#allocation9], 4294952928  ;;  %v2025_v0 = vmov 0   ;;  %v1630_v1 = vld [vmem:[#allocation5 + $0x4] ss:$8 sps:$4 sm:$0xff]  }
  0x5b   :  { %236 = vmatprep.mubr.bf16.mxu0 %v2025_v0  ;;  %v1632_v2 = vld [vmem:[#allocation5] ss:$8 sps:$4 sm:$0xff]   ;;  %204 = vmatprep.subr.bf16.mxu0 %v1630_v1  ;;  %v1633_v3 = vld [vmem:[#allocation5 + $0x14] ss:$8 sps:$4 sm:$0xff]   ;;  %v1635_v4 = vld [vmem:[#allocation5 + $0x10] ss:$8 sps:$4 sm:$0xff]  }
  0x5c   :  { %205 = vmatpush1.bf16.msra.mxu0 %v1632_v2  ;;  %v1636_v5 = vld [vmem:[#allocation5 + $0x24] ss:$8 sps:$4 sm:$0xff]   ;;  %v1638_v6 = vld [vmem:[#allocation5 + $0x20] ss:$8 sps:$4 sm:$0xff]   ;;  %v1639_v7 = vld [vmem:[#allocation5 + $0x34] ss:$8 sps:$4 sm:$0xff]  }
  0x5d   :  { %206 = vmatprep.subr.bf16.mxu0 %v1633_v3  ;;  %v1641_v8 = vld [vmem:[#allocation5 + $0x30] ss:$8 sps:$4 sm:$0xff]   ;;  %v1642_v9 = vld [vmem:[#allocation5 + $0x44] ss:$8 sps:$4 sm:$0xff]   ;;  %v1656_v11 = vld [vmem:[#allocation7] ss:$8 sps:$4 sm:$0xff]  }
  0x5e   :  { %v1654_v10 = vld [vmem:[#allocation7 + $0x4] ss:$8 sps:$4 sm:$0xff]   ;;  %v1657_v12 = vld [vmem:[#allocation7 + $0x14] ss:$8 sps:$4 sm:$0xff]   ;;  %v1644_v13 = vld [vmem:[#allocation5 + $0x40] ss:$8 sps:$4 sm:$0xff]  }
  0x5f   :  { %453 = vmatprep.subr.bf16.mxu1 %v1654_v10  ;;  %v1659_v14 = vld [vmem:[#allocation7 + $0x10] ss:$8 sps:$4 sm:$0xff]   ;;  %v1660_v15 = vld [vmem:[#allocation7 + $0x24] ss:$8 sps:$4 sm:$0xff]   ;;  %v1645_v16 = vld [vmem:[#allocation5 + $0x54] ss:$8 sps:$4 sm:$0xff]  }
  0x60   :  { %207 = vmatpush1.bf16.msra.mxu0 %v1635_v4  ;;  %454 = vmatpush1.bf16.msra.mxu1 %v1656_v11  ;;  %v1647_v17 = vld [vmem:[#allocation5 + $0x50] ss:$8 sps:$4 sm:$0xff]   ;;  %v1662_v18 = vld [vmem:[#allocation7 + $0x20] ss:$8 sps:$4 sm:$0xff]   ;;  %v1663_v19 = vld [vmem:[#allocation7 + $0x34] ss:$8 sps:$4 sm:$0xff]  }
  0x61   :  { %208 = vmatprep.subr.bf16.mxu0 %v1636_v5  ;;  %455 = vmatprep.subr.bf16.mxu1 %v1657_v12  ;;  %v1648_v20 = vld [vmem:[#allocation5 + $0x64] ss:$8 sps:$4 sm:$0xff]   ;;  %v1650_v21 = vld [vmem:[#allocation5 + $0x60] ss:$8 sps:$4 sm:$0xff]   ;;  %v1665_v22 = vld [vmem:[#allocation7 + $0x30] ss:$8 sps:$4 sm:$0xff]  }
  0x62   :  { %v1666_v23 = vld [vmem:[#allocation7 + $0x44] ss:$8 sps:$4 sm:$0xff]   ;;  %v1651_v24 = vld [vmem:[#allocation5 + $0x74] ss:$8 sps:$4 sm:$0xff]   ;;  %v1653_v25 = vld [vmem:[#allocation5 + $0x70] ss:$8 sps:$4 sm:$0xff]  }
  0x63   :  { %v1668_v26 = vld [vmem:[#allocation7 + $0x40] ss:$8 sps:$4 sm:$0xff]   ;;  %v1669_v27 = vld [vmem:[#allocation7 + $0x54] ss:$8 sps:$4 sm:$0xff]   ;;  %v1671_v29 = vld [vmem:[#allocation7 + $0x50] ss:$8 sps:$4 sm:$0xff]  }
  0x64   :  { %209 = vmatpush1.bf16.msra.mxu0 %v1638_v6  ;;  %456 = vmatpush1.bf16.msra.mxu1 %v1659_v14  ;;  %v95_v28 = vld [vmem:[#allocation2] sm:$0xf]  ;;  %v1672_v30 = vld [vmem:[#allocation7 + $0x64] ss:$8 sps:$4 sm:$0xff]   ;;  %v1674_v31 = vld [vmem:[#allocation7 + $0x60] ss:$8 sps:$4 sm:$0xff]  }
  0x65   :  { %210 = vmatprep.subr.bf16.mxu0 %v1639_v7  ;;  %457 = vmatprep.subr.bf16.mxu1 %v1660_v15  ;;  %v1675_v32 = vld [vmem:[#allocation7 + $0x74] ss:$8 sps:$4 sm:$0xff]   ;;  %v1677_v33 = vld [vmem:[#allocation7 + $0x70] ss:$8 sps:$4 sm:$0xff]   ;;  %v1678_v34 = vld [vmem:[#allocation7 + $0x84] ss:$8 sps:$4 sm:$0xff]   ;;  %v114_v15 = vlaneseq }
  0x66   :  { %v1680_v35 = vld [vmem:[#allocation7 + $0x80] ss:$8 sps:$4 sm:$0xff]   ;;  %v1681_v36 = vld [vmem:[#allocation7 + $0x94] ss:$8 sps:$4 sm:$0xff]   ;;  %v1683_v37 = vld [vmem:[#allocation7 + $0x90] ss:$8 sps:$4 sm:$0xff]  }
  0x67   :  { %v1684_v38 = vld [vmem:[#allocation7 + $0xa4] ss:$8 sps:$4 sm:$0xff]   ;;  %v1686_v39 = vld [vmem:[#allocation7 + $0xa0] ss:$8 sps:$4 sm:$0xff]   ;;  %v1687_v40 = vld [vmem:[#allocation7 + $0xb4] ss:$8 sps:$4 sm:$0xff]  }
  0x68   :  { %211 = vmatpush1.bf16.msra.mxu0 %v1641_v8  ;;  %458 = vmatpush1.bf16.msra.mxu1 %v1662_v18  ;;  %v1689_v41 = vld [vmem:[#allocation7 + $0xb0] ss:$8 sps:$4 sm:$0xff]   ;;  %v1690_v42 = vld [vmem:[#allocation7 + $0xc4] ss:$8 sps:$4 sm:$0xff]   ;;  %v1692_v43 = vld [vmem:[#allocation7 + $0xc0] ss:$8 sps:$4 sm:$0xff]  }
  0x69   :  { %212 = vmatprep.subr.bf16.mxu0 %v1642_v9  ;;  %459 = vmatprep.subr.bf16.mxu1 %v1663_v19  ;;  %v1693_v44 = vld [vmem:[#allocation7 + $0xd4] ss:$8 sps:$4 sm:$0xff]   ;;  %v1695_v45 = vld [vmem:[#allocation7 + $0xd0] ss:$8 sps:$4 sm:$0xff]   ;;  %v1696_v46 = vld [vmem:[#allocation7 + $0xe4] ss:$8 sps:$4 sm:$0xff]  }
  0x6a   :  { %v1698_v47 = vld [vmem:[#allocation7 + $0xe0] ss:$8 sps:$4 sm:$0xff]   ;;  %v1699_v48 = vld [vmem:[#allocation7 + $0xf4] ss:$8 sps:$4 sm:$0xff]   ;;  %v1701_v49 = vld [vmem:[#allocation7 + $0xf0] ss:$8 sps:$4 sm:$0xff]  }
  0x6b   :  { %v1702_v50 = vld [vmem:[#allocation10] ss:$28 sps:$4 sm:$0xff]   ;;  %v1707_v52 = vld [vmem:[#allocation10 + $0xc] ss:$28 sps:$4 sm:$0xff]   ;;  %v1708_v54 = vld [vmem:[#allocation10 + $0x38] ss:$28 sps:$4 sm:$0xff]  }
  0x6c   :  { %213 = vmatpush1.bf16.msra.mxu0 %v1644_v13  ;;  %460 = vmatpush1.bf16.msra.mxu1 %v1665_v22  ;;  %v1704_v51 = vld [vmem:[#allocation10 + $0x4] ss:$28 sps:$4 sm:$0xff]   ;;  %v1710_v53 = vld [vmem:[#allocation10 + $0x3c] ss:$28 sps:$4 sm:$0xff]   ;;  %v1716_v55 = vld [vmem:[#allocation10 + $0x74] ss:$28 sps:$4 sm:$0xff]  }
  0x6d   :  { %214 = vmatprep.subr.bf16.mxu0 %v1645_v16  ;;  %461 = vmatprep.subr.bf16.mxu1 %v1666_v23  ;;  %v1714_v56 = vld [vmem:[#allocation10 + $0x70] ss:$28 sps:$4 sm:$0xff]   ;;  %v1720_v58 = vld [vmem:[#allocation10 + $0xa8] ss:$28 sps:$4 sm:$0xff]   ;;  %v1726_v60 = vld [vmem:[#allocation10 + $0xe0] ss:$28 sps:$4 sm:$0xff]  }
  0x6e   :  { %v1722_v57 = vld [vmem:[#allocation10 + $0xac] ss:$28 sps:$4 sm:$0xff]   ;;  %v1728_v59 = vld [vmem:[#allocation10 + $0xe4] ss:$28 sps:$4 sm:$0xff]   ;;  %v1734_v61 = vld [vmem:[#allocation10 + $0x11c] ss:$28 sps:$4 sm:$0xff]  }
  0x6f   :  { %v1732_v62 = vld [vmem:[#allocation10 + $0x118] ss:$28 sps:$4 sm:$0xff]   ;;  %v1738_v0 = vld [vmem:[#allocation10 + $0x150] ss:$28 sps:$4 sm:$0xff]   ;;  %v1744_v2 = vld [vmem:[#allocation10 + $0x188] ss:$28 sps:$4 sm:$0xff]  }
  0x70   :  { %215 = vmatpush1.bf16.msra.mxu0 %v1647_v17  ;;  %462 = vmatpush1.bf16.msra.mxu1 %v1668_v26  ;;  %v1740_v63 = vld [vmem:[#allocation10 + $0x154] ss:$28 sps:$4 sm:$0xff]   ;;  %v1746_v1 = vld [vmem:[#allocation10 + $0x18c] ss:$28 sps:$4 sm:$0xff]   ;;  %v1752_v3 = vld [vmem:[#allocation10 + $0x1c4] ss:$28 sps:$4 sm:$0xff]  }
  0x71   :  { %216 = vmatprep.subr.bf16.mxu0 %v1648_v20  ;;  %463 = vmatprep.subr.bf16.mxu1 %v1669_v27  ;;  %v1750_v4 = vld [vmem:[#allocation10 + $0x1c0] ss:$28 sps:$4 sm:$0xff]   ;;  %v1756_v6 = vld [vmem:[#allocation10 + $0x1f8] ss:$28 sps:$4 sm:$0xff]   ;;  %v1762_v8 = vld [vmem:[#allocation10 + $0x230] ss:$28 sps:$4 sm:$0xff]  }
  0x72   :  { %v1758_v5 = vld [vmem:[#allocation10 + $0x1fc] ss:$28 sps:$4 sm:$0xff]   ;;  %v1764_v7 = vld [vmem:[#allocation10 + $0x234] ss:$28 sps:$4 sm:$0xff]   ;;  %v1770_v9 = vld [vmem:[#allocation10 + $0x26c] ss:$28 sps:$4 sm:$0xff]  }
  0x73   :  { %v1768_v10 = vld [vmem:[#allocation10 + $0x268] ss:$28 sps:$4 sm:$0xff]   ;;  %v1774_v12 = vld [vmem:[#allocation10 + $0x2a0] ss:$28 sps:$4 sm:$0xff]   ;;  %v1780_v14 = vld [vmem:[#allocation10 + $0x2d8] ss:$28 sps:$4 sm:$0xff]  }
  0x74   :  { %217 = vmatpush1.bf16.msra.mxu0 %v1650_v21  ;;  %464 = vmatpush1.bf16.msra.mxu1 %v1671_v29  ;;  %v1776_v11 = vld [vmem:[#allocation10 + $0x2a4] ss:$28 sps:$4 sm:$0xff]   ;;  %v1782_v13 = vld [vmem:[#allocation10 + $0x2dc] ss:$28 sps:$4 sm:$0xff]   ;;  %v2138_v16 = vshrl.u32 %v114_v15, 7 }
  0x75   :  { %218 = vmatprep.subr.bf16.mxu0 %v1651_v24  ;;  %465 = vmatprep.subr.bf16.mxu1 %v1672_v30  ;;  %v112_v18 = vld [vmem:[%s2189_s2] sm:$0x3] }
  0x76   :  { %v2141_v17 = vsub.s32 0, %v2138_v16  ;;  %v2147_v19 = vsub.s32 1, %v2138_v16 }
  0x78   :  { %219 = vmatpush1.bf16.msra.mxu0 %v1653_v25  ;;  %466 = vmatpush1.bf16.msra.mxu1 %v1674_v31  ;;  %v117_v20 = vrot.slane %v112_v18, %v2141_v17  ;;  %v121_v21 = vrot.slane %v112_v18, %v2147_v19  ;;  %v1705_v31 = vld [vmem:[#allocation10 + $0x8] ss:$28 sps:$4 sm:$0xff]  }
  0x79   :  { %467 = vmatprep.subr.bf16.mxu1 %v1675_v32  ;;  %1243 = vmatprep.subr.bf16.mxu0 %v1704_v51  ;;  %v1767_v51 = vld [vmem:[#allocation10 + $0x23c] ss:$28 sps:$4 sm:$0xff]  }
  0x7b   :  { %237 = vmatmul.mubr.bf16.vlgmr.msra.gmra.mrb[0].mxu0 %v95_v28 }
  0x7c   :  { %468 = vmatpush1.bf16.msra.mxu1 %v1677_v33  ;;  %1244 = vmatpush1.bf16.msra.mxu0 %v1702_v50  ;;  %v1713_v33 = vld [vmem:[#allocation10 + $0x44] ss:$28 sps:$4 sm:$0xff]  }
  0x7d   :  { %469 = vmatprep.subr.bf16.mxu1 %v1678_v34  ;;  %1245 = vmatprep.subr.bf16.mxu0 %v1710_v53  ;;  %v1711_v34 = vld [vmem:[#allocation10 + $0x40] ss:$28 sps:$4 sm:$0xff]   ;;  %v1773_v53 = vld [vmem:[#allocation10 + $0x274] ss:$28 sps:$4 sm:$0xff]  }
  0x7e   :  { %v1759_v50 = vld [vmem:[#allocation10 + $0x200] ss:$28 sps:$4 sm:$0xff]  }
  0x80   :  { %470 = vmatpush1.bf16.msra.mxu1 %v1680_v35  ;;  %1246 = vmatpush1.bf16.msra.mxu0 %v1708_v54  ;;  %v1719_v35 = vld [vmem:[#allocation10 + $0x7c] ss:$28 sps:$4 sm:$0xff]   ;;  %v1771_v54 = vld [vmem:[#allocation10 + $0x270] ss:$28 sps:$4 sm:$0xff]  }
  0x81   :  { %471 = vmatprep.subr.bf16.mxu1 %v1681_v36  ;;  %1247 = vmatprep.subr.bf16.mxu0 %v1716_v55  ;;  %v1717_v36 = vld [vmem:[#allocation10 + $0x78] ss:$28 sps:$4 sm:$0xff]   ;;  %v1779_v55 = vld [vmem:[#allocation10 + $0x2ac] ss:$28 sps:$4 sm:$0xff]  }
  0x84   :  { %472 = vmatpush1.bf16.msra.mxu1 %v1683_v37  ;;  %1248 = vmatpush1.bf16.msra.mxu0 %v1714_v56  ;;  %v1725_v37 = vld [vmem:[#allocation10 + $0xb4] ss:$28 sps:$4 sm:$0xff]   ;;  %v1777_v56 = vld [vmem:[#allocation10 + $0x2a8] ss:$28 sps:$4 sm:$0xff]  }
  0x85   :  { %473 = vmatprep.subr.bf16.mxu1 %v1684_v38  ;;  %1249 = vmatprep.subr.bf16.mxu0 %v1722_v57  ;;  %v1723_v38 = vld [vmem:[#allocation10 + $0xb0] ss:$28 sps:$4 sm:$0xff]   ;;  %v1785_v57 = vld [vmem:[#allocation10 + $0x2e4] ss:$28 sps:$4 sm:$0xff]  }
  0x88   :  { %474 = vmatpush1.bf16.msra.mxu1 %v1686_v39  ;;  %1250 = vmatpush1.bf16.msra.mxu0 %v1720_v58  ;;  %v1731_v39 = vld [vmem:[#allocation10 + $0xec] ss:$28 sps:$4 sm:$0xff]   ;;  %v1783_v58 = vld [vmem:[#allocation10 + $0x2e0] ss:$28 sps:$4 sm:$0xff]  }
  0x89   :  { %475 = vmatprep.subr.bf16.mxu1 %v1687_v40  ;;  %1251 = vmatprep.subr.bf16.mxu0 %v1728_v59  ;;  %v1729_v40 = vld [vmem:[#allocation10 + $0xe8] ss:$28 sps:$4 sm:$0xff]   ;;  %v1788_v59 = vld [vmem:[#allocation10 + $0x314] ss:$28 sps:$4 sm:$0xff]  }
  0x8c   :  { %476 = vmatpush1.bf16.msra.mxu1 %v1689_v41  ;;  %1252 = vmatpush1.bf16.msra.mxu0 %v1726_v60  ;;  %v1737_v41 = vld [vmem:[#allocation10 + $0x124] ss:$28 sps:$4 sm:$0xff]   ;;  %v1791_v60 = vld [vmem:[#allocation10 + $0x31c] ss:$28 sps:$4 sm:$0xff]  }
  0x8d   :  { %477 = vmatprep.subr.bf16.mxu1 %v1690_v42  ;;  %1253 = vmatprep.subr.bf16.mxu0 %v1734_v61  ;;  %v1735_v42 = vld [vmem:[#allocation10 + $0x120] ss:$28 sps:$4 sm:$0xff]   ;;  %v1786_v61 = vld [vmem:[#allocation10 + $0x310] ss:$28 sps:$4 sm:$0xff]  }
  0x90   :  { %478 = vmatpush1.bf16.msra.mxu1 %v1692_v43  ;;  %1254 = vmatpush1.bf16.msra.mxu0 %v1732_v62  ;;  %v1743_v43 = vld [vmem:[#allocation10 + $0x15c] ss:$28 sps:$4 sm:$0xff]  }
  0x91   :  { %479 = vmatprep.subr.bf16.mxu1 %v1693_v44  ;;  %1255 = vmatprep.subr.bf16.mxu0 %v1740_v63  ;;  %v1741_v44 = vld [vmem:[#allocation10 + $0x158] ss:$28 sps:$4 sm:$0xff]   ;;  %v1794_v63 = vld [vmem:[#allocation10 + $0x34c] ss:$28 sps:$4 sm:$0xff]  }
  0x92   :  { %v1789_v62 = vld [vmem:[#allocation10 + $0x318] ss:$28 sps:$4 sm:$0xff]  }
  0x94   :  { %480 = vmatpush1.bf16.msra.mxu1 %v1695_v45  ;;  %1256 = vmatpush1.bf16.msra.mxu0 %v1738_v0  ;;  %v1749_v45 = vld [vmem:[#allocation10 + $0x194] ss:$28 sps:$4 sm:$0xff]  }
  0x95   :  { %481 = vmatprep.subr.bf16.mxu1 %v1696_v46  ;;  %1257 = vmatprep.subr.bf16.mxu0 %v1746_v1  ;;  %v1747_v46 = vld [vmem:[#allocation10 + $0x190] ss:$28 sps:$4 sm:$0xff]   ;;  %v1792_v1 = vld [vmem:[#allocation10 + $0x348] ss:$28 sps:$4 sm:$0xff]  }
  0x96   :  { %v1797_v0 = vld [vmem:[#allocation10 + $0x354] ss:$28 sps:$4 sm:$0xff]  }
  0x98   :  { %482 = vmatpush1.bf16.msra.mxu1 %v1698_v47  ;;  %1258 = vmatpush1.bf16.msra.mxu0 %v1744_v2  ;;  %v1755_v47 = vld [vmem:[#allocation10 + $0x1cc] ss:$28 sps:$4 sm:$0xff]  }
  0x99   :  { %483 = vmatprep.subr.bf16.mxu1 %v1699_v48  ;;  %1259 = vmatprep.subr.bf16.mxu0 %v1752_v3  ;;  %v1753_v48 = vld [vmem:[#allocation10 + $0x1c8] ss:$28 sps:$4 sm:$0xff]   ;;  %v1795_v2 = vld [vmem:[#allocation10 + $0x350] ss:$28 sps:$4 sm:$0xff]  }
  0x9a   :  { %v1800_v3 = vld [vmem:[#allocation10 + $0x14] ss:$28 sps:$4 sm:$0xff]  }
  0x9c   :  { %484 = vmatpush1.bf16.msra.mxu1 %v1701_v49  ;;  %1260 = vmatpush1.bf16.msra.mxu0 %v1750_v4  ;;  %v1761_v49 = vld [vmem:[#allocation10 + $0x204] ss:$28 sps:$4 sm:$0xff]   ;;  %v1801_v4 = vld [vmem:[#allocation10 + $0x1d8] ss:$28 sps:$4 sm:$0xff]  }
  0x9d   :  { %1284 = vmatprep.subr.bf16.mxu1 %v1707_v52  ;;  %1261 = vmatprep.subr.bf16.mxu0 %v1758_v5  ;;  %v1765_v52 = vld [vmem:[#allocation10 + $0x238] ss:$28 sps:$4 sm:$0xff]   ;;  %v281_v5 = vld [vmem:[#allocation8] sm:$0x3] }
  0xa0   :  { %1262 = vmatpush1.bf16.msra.mxu0 %v1756_v6  ;;  %v286_v6 = vrot.slane %v281_v5, %v2141_v17 }
  0xa1   :  { %1263 = vmatprep.subr.bf16.mxu0 %v1764_v7  ;;  %v290_v7 = vrot.slane %v281_v5, %v2147_v19  ;;  %v1861_v5 = vld [vmem:[#allocation10 + $0x35c] ss:$28 sps:$4 sm:$0xff]  }
  0xa4   :  { %1264 = vmatpush1.bf16.msra.mxu0 %v1762_v8 }
  0xa5   :  { %1265 = vmatprep.subr.bf16.mxu0 %v1770_v9  ;;  %v494_v9 = vld [vmem:[%s2194_s7] sm:$0xff] }
  0xa8   :  { %1266 = vmatpush1.bf16.msra.mxu0 %v1768_v10 }
  0xa9   :  { %1267 = vmatprep.subr.bf16.mxu0 %v1776_v11 }
  0xac   :  { %1268 = vmatpush1.bf16.msra.mxu0 %v1774_v12  ;;  %v495_v12 = vld [vmem:[%s2194_s7 + $0x8] sm:$0xff] }
  0xad   :  { %1269 = vmatprep.subr.bf16.mxu0 %v1782_v13 }
  0xb0   :  { %1270 = vmatpush1.bf16.msra.mxu0 %v1780_v14 }
  0xb1   :  { %1271 = vmatprep.subr.bf16.mxu0 %v1788_v59  ;;  %v1846_v59 = vld [vmem:[#allocation10 + $0x244] ss:$28 sps:$4 sm:$0xff]  }
  0xb4   :  { %1272 = vmatpush1.bf16.msra.mxu0 %v1786_v61  ;;  %v1849_v61 = vld [vmem:[#allocation10 + $0x27c] ss:$28 sps:$4 sm:$0xff]  }
  0xb5   :  { %1273 = vmatprep.subr.bf16.mxu0 %v1794_v63  ;;  %v1852_v63 = vld [vmem:[#allocation10 + $0x2b4] ss:$28 sps:$4 sm:$0xff]  }
  0xb8   :  { %1274 = vmatpush1.bf16.msra.mxu0 %v1792_v1  ;;  %v1855_v1 = vld [vmem:[#allocation10 + $0x2ec] ss:$28 sps:$4 sm:$0xff]  }
  0xb9   :  { %1325 = vmatprep.subr.bf16.mxu0 %v1800_v3  ;;  %v1858_v3 = vld [vmem:[#allocation10 + $0x324] ss:$28 sps:$4 sm:$0xff]  }
 0x14e   :  { %v238_v22 = vpop.f32.mrb[0].mxu0 }
 0x14f   :  { %v239_v23 = vadd.f32 %v238_v22, %v117_v20  ;;  %v240_v24 = vpop.f32.mrb[1].mxu0 }
 0x150   :  { %v241_v25 = vadd.f32 %v240_v24, %v121_v21  ;;  %v242_v26 = vpop.f32.mrb[2].mxu0  ;;  %v1798_v24 = vld [vmem:[#allocation10 + $0x10] ss:$28 sps:$4 sm:$0xff]  }
 0x151   :  { %v245_v27 = vmax.f32 %v239_v23, 0.0  ;;  %v243_v28 = vpop.f32.mrb[3].mxu0 }
 0x152   :  { %v246_v29 = vmax.f32 %v241_v25, 0.0  ;;  %v1802_v25 = vld [vmem:[#allocation10 + $0x18] ss:$28 sps:$4 sm:$0xff]   ;;  %v1806_v28 = vld [vmem:[#allocation10 + $0x210] ss:$28 sps:$4 sm:$0xff]  }
 0x153   :  { %v247_v32 = vpack.c.bf16 %v245_v27, %v245_v27  ;;  %v1805_v27 = vld [vmem:[#allocation10 + $0x4c] ss:$28 sps:$4 sm:$0xff]  }
 0x154   :  { %v248_v30 = vpack.c.bf16 %v246_v29, %v246_v29  ;;  %v1803_v29 = vld [vmem:[#allocation10 + $0x48] ss:$28 sps:$4 sm:$0xff]  }
 0x156   :  { %485 = vmatprep.mubr.bf16.mxu1 %v248_v30  ;;  %v1807_v30 = vld [vmem:[#allocation10 + $0x50] ss:$28 sps:$4 sm:$0xff]  }
 0x157   :  { %486 = vmatmul.mubr.bf16.vlgmr.msra.gmra.mrb[0].mxu1 %v247_v32  ;;  %v1811_v32 = vld [vmem:[#allocation10 + $0x248] ss:$28 sps:$4 sm:$0xff]  }
 0x158   :  { %1285 = vmatpush1.bf16.msra.mxu1 %v1705_v31  ;;  %v1810_v31 = vld [vmem:[#allocation10 + $0x84] ss:$28 sps:$4 sm:$0xff]  }
 0x159   :  { %1286 = vmatprep.subr.bf16.mxu1 %v1713_v33  ;;  %v1808_v33 = vld [vmem:[#allocation10 + $0x80] ss:$28 sps:$4 sm:$0xff]  }
 0x15c   :  { %1287 = vmatpush1.bf16.msra.mxu1 %v1711_v34  ;;  %v1812_v34 = vld [vmem:[#allocation10 + $0x88] ss:$28 sps:$4 sm:$0xff]  }
 0x15d   :  { %1288 = vmatprep.subr.bf16.mxu1 %v1719_v35  ;;  %v1815_v35 = vld [vmem:[#allocation10 + $0xbc] ss:$28 sps:$4 sm:$0xff]  }
 0x160   :  { %1289 = vmatpush1.bf16.msra.mxu1 %v1717_v36  ;;  %v1816_v36 = vld [vmem:[#allocation10 + $0x280] ss:$28 sps:$4 sm:$0xff]  }
 0x161   :  { %1290 = vmatprep.subr.bf16.mxu1 %v1725_v37  ;;  %v1813_v37 = vld [vmem:[#allocation10 + $0xb8] ss:$28 sps:$4 sm:$0xff]  }
 0x164   :  { %1291 = vmatpush1.bf16.msra.mxu1 %v1723_v38  ;;  %v1817_v38 = vld [vmem:[#allocation10 + $0xc0] ss:$28 sps:$4 sm:$0xff]  }
 0x165   :  { %1292 = vmatprep.subr.bf16.mxu1 %v1731_v39  ;;  %v1820_v39 = vld [vmem:[#allocation10 + $0xf4] ss:$28 sps:$4 sm:$0xff]  }
 0x168   :  { %1293 = vmatpush1.bf16.msra.mxu1 %v1729_v40  ;;  %v1821_v40 = vld [vmem:[#allocation10 + $0x2b8] ss:$28 sps:$4 sm:$0xff]  }
 0x169   :  { %1294 = vmatprep.subr.bf16.mxu1 %v1737_v41  ;;  %v1818_v41 = vld [vmem:[#allocation10 + $0xf0] ss:$28 sps:$4 sm:$0xff]  }
 0x16c   :  { %1295 = vmatpush1.bf16.msra.mxu1 %v1735_v42  ;;  %v1822_v42 = vld [vmem:[#allocation10 + $0xf8] ss:$28 sps:$4 sm:$0xff]  }
 0x16d   :  { %1296 = vmatprep.subr.bf16.mxu1 %v1743_v43  ;;  %v1825_v43 = vld [vmem:[#allocation10 + $0x12c] ss:$28 sps:$4 sm:$0xff]  }
 0x170   :  { %1297 = vmatpush1.bf16.msra.mxu1 %v1741_v44  ;;  %v1826_v44 = vld [vmem:[#allocation10 + $0x2f0] ss:$28 sps:$4 sm:$0xff]  }
 0x171   :  { %1298 = vmatprep.subr.bf16.mxu1 %v1749_v45  ;;  %v1823_v45 = vld [vmem:[#allocation10 + $0x128] ss:$28 sps:$4 sm:$0xff]  }
 0x174   :  { %1299 = vmatpush1.bf16.msra.mxu1 %v1747_v46  ;;  %v1827_v46 = vld [vmem:[#allocation10 + $0x130] ss:$28 sps:$4 sm:$0xff]  }
 0x175   :  { %1300 = vmatprep.subr.bf16.mxu1 %v1755_v47  ;;  %v1830_v47 = vld [vmem:[#allocation10 + $0x164] ss:$28 sps:$4 sm:$0xff]  }
 0x178   :  { %1301 = vmatpush1.bf16.msra.mxu1 %v1753_v48  ;;  %v1831_v48 = vld [vmem:[#allocation10 + $0x328] ss:$28 sps:$4 sm:$0xff]  }
 0x179   :  { %1302 = vmatprep.subr.bf16.mxu1 %v1761_v49  ;;  %v1828_v49 = vld [vmem:[#allocation10 + $0x160] ss:$28 sps:$4 sm:$0xff]  }
 0x17c   :  { %1303 = vmatpush1.bf16.msra.mxu1 %v1759_v50  ;;  %v1832_v50 = vld [vmem:[#allocation10 + $0x168] ss:$28 sps:$4 sm:$0xff]  }
 0x17d   :  { %1304 = vmatprep.subr.bf16.mxu1 %v1767_v51  ;;  %v1835_v51 = vld [vmem:[#allocation10 + $0x19c] ss:$28 sps:$4 sm:$0xff]  }
 0x180   :  { %1305 = vmatpush1.bf16.msra.mxu1 %v1765_v52  ;;  %v1836_v52 = vld [vmem:[#allocation10 + $0x360] ss:$28 sps:$4 sm:$0xff]  }
 0x181   :  { %1306 = vmatprep.subr.bf16.mxu1 %v1773_v53  ;;  %v1833_v53 = vld [vmem:[#allocation10 + $0x198] ss:$28 sps:$4 sm:$0xff]  }
 0x184   :  { %1307 = vmatpush1.bf16.msra.mxu1 %v1771_v54  ;;  %v1837_v54 = vld [vmem:[#allocation10 + $0x1a0] ss:$28 sps:$4 sm:$0xff]  }
 0x185   :  { %1308 = vmatprep.subr.bf16.mxu1 %v1779_v55  ;;  %v1840_v55 = vld [vmem:[#allocation10 + $0x1d4] ss:$28 sps:$4 sm:$0xff]  }
 0x188   :  { %1309 = vmatpush1.bf16.msra.mxu1 %v1777_v56  ;;  %v1838_v56 = vld [vmem:[#allocation10 + $0x1d0] ss:$28 sps:$4 sm:$0xff]  }
 0x189   :  { %1310 = vmatprep.subr.bf16.mxu1 %v1785_v57  ;;  %v1843_v57 = vld [vmem:[#allocation10 + $0x20c] ss:$28 sps:$4 sm:$0xff]  }
 0x18c   :  { %1311 = vmatpush1.bf16.msra.mxu1 %v1783_v58  ;;  %v1841_v58 = vld [vmem:[#allocation10 + $0x208] ss:$28 sps:$4 sm:$0xff]  }
 0x18d   :  { %1312 = vmatprep.subr.bf16.mxu1 %v1791_v60  ;;  %v1844_v60 = vld [vmem:[#allocation10 + $0x240] ss:$28 sps:$4 sm:$0xff]  }
 0x190   :  { %1313 = vmatpush1.bf16.msra.mxu1 %v1789_v62  ;;  %v1847_v62 = vld [vmem:[#allocation10 + $0x278] ss:$28 sps:$4 sm:$0xff]  }
 0x191   :  { %1314 = vmatprep.subr.bf16.mxu1 %v1797_v0  ;;  %v1850_v0 = vld [vmem:[#allocation10 + $0x2b0] ss:$28 sps:$4 sm:$0xff]  }
 0x194   :  { %1315 = vmatpush1.bf16.msra.mxu1 %v1795_v2  ;;  %v1853_v2 = vld [vmem:[#allocation10 + $0x2e8] ss:$28 sps:$4 sm:$0xff]  }
 0x195   :  { %1597 = vmatprep.subr.bf16.mxu1 %v1801_v4  ;;  %v1856_v4 = vld [vmem:[#allocation10 + $0x320] ss:$28 sps:$4 sm:$0xff]  }
 0x22a   :  { %v487_v8 = vpop.f32.mrb[0].mxu1 }
 0x22b   :  { %v488_v10 = vadd.f32 %v487_v8, %v286_v6  ;;  %v489_v11 = vpop.f32.mrb[1].mxu1  ;;  %v1859_v6 = vld [vmem:[#allocation10 + $0x358] ss:$28 sps:$4 sm:$0xff]   ;;  %v630_v8 = vld [vmem:[%s2193_s6] sm:$0xff]  ;;  %s2026_s6 = smov [#allocation11]  }
 0x22c   :  { %v490_v13 = vadd.f32 %v489_v11, %v290_v7  ;;  %v491_v14 = vpop.f32.mrb[2].mxu1  ;;  %v642_v7 = vsub.s32 2, %v2138_v16  ;;  %s1426_s27 = sshll.u32 %s2026_s6, 4  ;;  %s1427_s27 = int_to_ptr.vmem [resolvable:$true] %s1426_s27 }
 0x22d   :  { %v496_v15 = vmul.f32 %v494_v9, %v488_v10  ;;  %v492_v18 = vpop.f32.mrb[3].mxu1  ;;  %v646_v9 = vsub.s32 3, %v2138_v16  ;;  %v635_v10 = vrot.slane %v630_v8, %v2141_v17  ;;  %s1986_s29 = scalar_lea.vmem %s1427_s27, 896  ;;  %p1991_p13 = scmp.lt.s32.totalorder %s1427_s27, %s1427_s27 }
 0x22e   :  { %v497_v20 = vmul.f32 %v495_v12, %v490_v13  ;;  %v643_v11 = vrot.slane %v630_v8, %v642_v7  ;;  %v639_v12 = vrot.slane %v630_v8, %v2147_v19  ;;  %p1987_p12 = scmp.ne.s32.totalorder %s1427_s27, %s1986_s29  ;;  %p1992_p0 = scmp.lt.s32.totalorder %s1986_s29, %s1986_s29 }
 0x22f   :  { %v498_v21 = vmax.f32 %v496_v15, 0.0  ;;  %v647_v13 = vrot.slane %v630_v8, %v646_v9 }
 0x230   :  { %v499_v22 = vmax.f32 %v497_v20, 0.0  ;;  %p1993_p1 = por %p1992_p0, %p1991_p13 }
 0x231   :  { %v2159_v26 = vpack.c.bf16 %v498_v21, %v498_v21 }
 0x232   :  { %v501_v23 = vpack.c.bf16 %v499_v22, %v499_v22  ;;  %p1994_p2 = pnand %p1993_p1, %p1987_p12 }
 0x234   :  { %1275 = vmatprep.mubr.bf16.mxu0 %v501_v23  ;;  %1316 = vmatprep.mubr.bf16.mxu1 %v501_v23 }
 0x235   :  { %1276 = vmatmul.mubr.bf16.vlgmr.msra.gmra.mrb[4].mxu0 %v2159_v26  ;;  %1317 = vmatmul.mubr.bf16.vlgmr.msra.gmra.mrb[4].mxu1 %v2159_v26 }
 0x236   :  { %1326 = vmatpush1.bf16.msra.mxu0 %v1798_v24  ;;  %1598 = vmatpush3.bf16.msra.mxu1 %v1802_v25 }
 0x237   :  { %1357 = vmatprep.mubr.bf16.mxu0 %v501_v23  ;;  %1398 = vmatprep.mubr.bf16.mxu1 %v501_v23 }
 0x238   :  { %1327 = vmatprep.subr.bf16.mxu0 %v1805_v27  ;;  %1599 = vmatprep.subr.bf16.mxu1 %v1806_v28 }
 0x23a   :  { %1328 = vmatpush1.bf16.msra.mxu0 %v1803_v29  ;;  %1600 = vmatpush3.bf16.msra.mxu1 %v1807_v30 }
 0x23b   :  { %1329 = vmatprep.subr.bf16.mxu0 %v1810_v31  ;;  %1601 = vmatprep.subr.bf16.mxu1 %v1811_v32  ;;  %v658_v31 = vsub.s32 6, %v2138_v16 }
 0x23e   :  { %1330 = vmatpush1.bf16.msra.mxu0 %v1808_v33  ;;  %1602 = vmatpush3.bf16.msra.mxu1 %v1812_v34  ;;  %v659_v33 = vrot.slane %v630_v8, %v658_v31 }
 0x23f   :  { %1331 = vmatprep.subr.bf16.mxu0 %v1815_v35  ;;  %1603 = vmatprep.subr.bf16.mxu1 %v1816_v36 }
 0x242   :  { %1332 = vmatpush1.bf16.msra.mxu0 %v1813_v37  ;;  %1604 = vmatpush3.bf16.msra.mxu1 %v1817_v38 }
 0x243   :  { %1333 = vmatprep.subr.bf16.mxu0 %v1820_v39  ;;  %1605 = vmatprep.subr.bf16.mxu1 %v1821_v40  ;;  %v650_v40 = vsub.s32 4, %v2138_v16 }
 0x246   :  { %1334 = vmatpush1.bf16.msra.mxu0 %v1818_v41  ;;  %1606 = vmatpush3.bf16.msra.mxu1 %v1822_v42  ;;  %v654_v41 = vsub.s32 5, %v2138_v16  ;;  %v651_v42 = vrot.slane %v630_v8, %v650_v40 }
 0x247   :  { %1335 = vmatprep.subr.bf16.mxu0 %v1825_v43  ;;  %1607 = vmatprep.subr.bf16.mxu1 %v1826_v44 }
 0x248   :  { %v655_v43 = vrot.slane %v630_v8, %v654_v41 }
 0x24a   :  { %1336 = vmatpush1.bf16.msra.mxu0 %v1823_v45  ;;  %1608 = vmatpush3.bf16.msra.mxu1 %v1827_v46 }
 0x24b   :  { %1337 = vmatprep.subr.bf16.mxu0 %v1830_v47  ;;  %1609 = vmatprep.subr.bf16.mxu1 %v1831_v48 }
 0x24e   :  { %1338 = vmatpush1.bf16.msra.mxu0 %v1828_v49  ;;  %1610 = vmatpush3.bf16.msra.mxu1 %v1832_v50 }
 0x24f   :  { %1339 = vmatprep.subr.bf16.mxu0 %v1835_v51  ;;  %1611 = vmatprep.subr.bf16.mxu1 %v1836_v52 }
 0x252   :  { %1340 = vmatpush1.bf16.msra.mxu0 %v1833_v53  ;;  %1612 = vmatpush3.bf16.msra.mxu1 %v1837_v54 }
 0x253   :  { %1341 = vmatprep.subr.bf16.mxu0 %v1840_v55 }
 0x255   :  { %1399 = vmatmul.mubr.bf16.vlgmr.msra.gmra.mrb[8].mxu1 %v2159_v26 }
 0x256   :  { %1342 = vmatpush1.bf16.msra.mxu0 %v1838_v56 }
 0x257   :  { %1343 = vmatprep.subr.bf16.mxu0 %v1843_v57 }
 0x25a   :  { %1344 = vmatpush1.bf16.msra.mxu0 %v1841_v58 }
 0x25b   :  { %1345 = vmatprep.subr.bf16.mxu0 %v1846_v59 }
 0x25e   :  { %1346 = vmatpush1.bf16.msra.mxu0 %v1844_v60 }
 0x25f   :  { %1347 = vmatprep.subr.bf16.mxu0 %v1849_v61 }
 0x262   :  { %1348 = vmatpush1.bf16.msra.mxu0 %v1847_v62 }
 0x263   :  { %1349 = vmatprep.subr.bf16.mxu0 %v1852_v63 }
 0x266   :  { %1350 = vmatpush1.bf16.msra.mxu0 %v1850_v0 }
 0x267   :  { %1351 = vmatprep.subr.bf16.mxu0 %v1855_v1 }
 0x26a   :  { %1352 = vmatpush1.bf16.msra.mxu0 %v1853_v2 }
 0x26b   :  { %1353 = vmatprep.subr.bf16.mxu0 %v1858_v3 }
 0x26e   :  { %1354 = vmatpush1.bf16.msra.mxu0 %v1856_v4 }
 0x26f   :  { %1355 = vmatprep.subr.bf16.mxu0 %v1861_v5 }
 0x272   :  { %1356 = vmatpush1.bf16.msra.mxu0 %v1859_v6 }
 0x275   :  { %1358 = vmatmul.mubr.bf16.vlgmr.msra.gmra.mrb[8].mxu0 %v2159_v26 }
 0x308   :  { %v1277_v14 = vpop.f32.mrb[4].mxu0  ;;  %v1318_v15 = vpop.f32.mrb[4].mxu1 }
 0x309   :  { %v1278_v18 = vadd.f32 %v1277_v14, %v635_v10  ;;  %v1319_v20 = vadd.f32 %v1318_v15, %v643_v11  ;;  %v1279_v21 = vpop.f32.mrb[5].mxu0  ;;  %v1320_v22 = vpop.f32.mrb[5].mxu1 }
 0x30a   :  { %v1280_v23 = vadd.f32 %v1279_v21, %v639_v12  ;;  %v1321_v24 = vadd.f32 %v1320_v22, %v647_v13  ;;  %v1281_v25 = vpop.f32.mrb[6].mxu0  ;;  %v1322_v26 = vpop.f32.mrb[6].mxu1 }
 0x30b   :  { %1862 = vtanh.f32 %v1278_v18  ;;  %v1282_v27 = vpop.f32.mrb[7].mxu0  ;;  %v1323_v28 = vpop.f32.mrb[7].mxu1 }
 0x30c   :  { %1864 = vtanh.f32 %v1319_v20 }
 0x30d   :  { %1866 = vtanh.f32 %v1280_v23 }
 0x30e   :  { %1868 = vtanh.f32 %v1321_v24 }
 0x315   :  { %v1863_v17 = vpop.eup %1862 }
 0x316   :  { %v1865_v29 = vpop.eup %1864  ;;  %1413 = vst [vmem:[#allocation11] sm:$0xff] %v1863_v17 }
 0x317   :  { %v1867_v19 = vpop.eup %1866  ;;  %1415 = vst [vmem:[#allocation11 + $0x10] sm:$0xff] %v1865_v29 }
 0x318   :  { %v1869_v30 = vpop.eup %1868  ;;  %1414 = vst [vmem:[#allocation11 + $0x8] sm:$0xff] %v1867_v19 }
 0x319   :  { %1416 = vst [vmem:[#allocation11 + $0x18] sm:$0xff] %v1869_v30 }
 0x328   :  { %v1613_v32 = vpop.f32.mrb[8].mxu1 }
 0x329   :  { %v1614_v34 = vpop.f32.mrb[9].mxu1 }
 0x32a   :  { %v1615_v35 = vadd.f32 %v1614_v34, %v1613_v32  ;;  %v1616_v36 = vpop.f32.mrb[10].mxu1 }
 0x32b   :  { %v1617_v37 = vpop.f32.mrb[11].mxu1 }
 0x32c   :  { %v1401_v38 = vadd.f32 %v1615_v35, %v659_v33 }
 0x32e   :  { %1870 = vtanh.f32 %v1401_v38 }
 0x338   :  { %v1871_v39 = vpop.eup %1870 }
 0x339   :  { %1419 = vst [vmem:[#allocation11 + $0x30] sm:$0xff] %v1871_v39 }
 0x348   :  { %v1359_v44 = vpop.f32.mrb[8].mxu0 }
 0x349   :  { %v1360_v45 = vadd.f32 %v1359_v44, %v651_v42  ;;  %v1361_v46 = vpop.f32.mrb[9].mxu0 }
 0x34a   :  { %v1362_v47 = vadd.f32 %v1361_v46, %v655_v43  ;;  %v1363_v48 = vpop.f32.mrb[10].mxu0 }
 0x34b   :  { %1872 = vtanh.f32 %v1360_v45  ;;  %v1364_v49 = vpop.f32.mrb[11].mxu0 }
 0x34c   :  { %1874 = vtanh.f32 %v1362_v47 }
 0x355   :  { %v1873_v50 = vpop.eup %1872 }
 0x356   :  { %v1875_v51 = vpop.eup %1874  ;;  %1417 = vst [vmem:[#allocation11 + $0x20] sm:$0xff] %v1873_v50 }
 0x357   :  { %1418 = vst [vmem:[#allocation11 + $0x28] sm:$0xff] %v1875_v51 }
 0x358   :  { %1997 = shalt.err (!%p1994_p2)
}
 0x359   :  { %s1998_s28 = scalar_lea.hbm %s2195_s8, 896 }
 0x35a   :  { %p1999_p3 = scmp.ne.s32.totalorder %s2195_s8, %s1998_s28  ;;  %p2002_p4 = scmp.lt.u32.totalorder %s1998_s28, %s2195_s8 }
 0x35c   :  { %p2004_p5 = pnand %p2002_p4, %p1999_p3 }
 0x35e   :  { %2007 = shalt.err (!%p2004_p5)
}
 0x35f   :  { %1429 = dma.vmem_to_hbm [thread:$0]  %s1427_s27, 896, %s2195_s8, [#allocation4]  }
 0x360   :  { %2014 = dma.done.wait [#allocation4], 896  }
 0x361   :  { %2015 = vsyncadd [#allocation4], 4294966400 }
 0x362   :  { %1433 = vsyncpa [#allocation3], 1 }
 0x363   :  { %1434 = vsyncpa [#allocation6], 1 }
 0x364   :  { %1435 = vsyncpa [#allocation9], 1 }
 0x365   :  { %1436 = vsyncpa [#allocation4], 1 }

</bundles_post_ra>
